<compile_context>
chip_gen: v7x
topology: tpu7x:2x2x1
jax: 0.10.0
libtpu: 0.0.40
codegen_flags: <defaults>
</compile_context>

<pallas_src>
import functools

import jax
import jax.numpy as jnp
from jax.experimental import pallas as pl
from jax.experimental.pallas import tpu as pltpu


def _round_up(x, m):
    return ((x + m - 1) // m) * m


def _pick_tile(dim_padded, target, granule):
    """Largest multiple of `granule` that divides `dim_padded` and is <= target."""
    t = max(granule, (min(target, dim_padded) // granule) * granule)
    while dim_padded % t != 0:
        t -= granule
    return t


# -----------------------------------------------------------------------------
# Generic tiled matmul + bias:  out = x @ w + b   (bf16 operands, f32 accum).
# Used for (a) the hoisted per-layer input projection x @ Wih + b and
# (b) the decoder.  Reduction axis last ("arbitrary"), lane-dense output tiles.
# -----------------------------------------------------------------------------
def _matmul_bias_kernel(x_ref, w_ref, b_ref, o_ref, acc_ref):
    k = pl.program_id(2)

    @pl.when(k == 0)
    def _init():
        acc_ref[...] = jnp.zeros_like(acc_ref)

    acc_ref[...] += jnp.dot(x_ref[...], w_ref[...],
                            preferred_element_type=jnp.float32)

    @pl.when(k == pl.num_programs(2) - 1)
    def _finalize():
        o_ref[...] = (acc_ref[...] + b_ref[...]).astype(o_ref.dtype)


def matmul_bias(x, w, b, *, out_dtype=jnp.bfloat16, tm=512, tn=1024, tk=512):
    """x: (M, K), w: (K, N), b: (1, N) -> (M, N).

    Operands are cast to bf16 (MXU peak), accumulation is f32 in VMEM scratch.
    Inputs are zero-padded to tile multiples (exact for matmul, no-op when
    already aligned) and the result is sliced back."""
    M, K = x.shape
    N = w.shape[1]

    Mp = _round_up(M, 8)
    Kp = _round_up(K, 128)
    Np = _round_up(N, 128)

    tm = _pick_tile(Mp, tm, 8)
    tn = _pick_tile(Np, tn, 128)
    tk = _pick_tile(Kp, tk, 128)

    # v7x has 2 TensorCores: when M is small and both parallel axes collapse to
    # a single tile, shrink tn (never tm) so at least one parallel axis has >= 2
    # tiles and both cores get work.
    if (Mp // tm) < 2 and (Np // tn) < 2 and Np >= 256:
        tn = _pick_tile(Np, Np // 2, 128)

    x = x.astype(jnp.bfloat16)
    w = w.astype(jnp.bfloat16)
    b = b.astype(jnp.float32)
    xp = jnp.pad(x, ((0, Mp - M), (0, Kp - K))) if (Mp, Kp) != (M, K) else x
    wp = jnp.pad(w, ((0, Kp - K), (0, Np - N))) if (Kp, Np) != (K, N) else w
    bp = jnp.pad(b, ((0, 0), (0, Np - N))) if Np != N else b

    out = pl.pallas_call(
        _matmul_bias_kernel,
        grid_spec=pltpu.PrefetchScalarGridSpec(
            num_scalar_prefetch=0,
            grid=(Mp // tm, Np // tn, Kp // tk),
            in_specs=[
                pl.BlockSpec((tm, tk), lambda i, j, k: (i, k)),
                pl.BlockSpec((tk, tn), lambda i, j, k: (k, j)),
                pl.BlockSpec((1, tn), lambda i, j, k: (0, j)),
            ],
            out_specs=pl.BlockSpec((tm, tn), lambda i, j, k: (i, j)),
            scratch_shapes=[pltpu.VMEM((tm, tn), jnp.float32)],
        ),
        out_shape=jax.ShapeDtypeStruct((Mp, Np), out_dtype),
        compiler_params=pltpu.CompilerParams(
            dimension_semantics=("parallel", "parallel", "arbitrary"),
            vmem_limit_bytes=64 * 1024 * 1024),
    )(xp, wp, bp)
    return out[:M, :N]


# -----------------------------------------------------------------------------
# LSTM recurrence kernel.  Grid iterates over time CHUNKS; inside the kernel a
# fori_loop walks the chunk with h/c resident in VMEM scratch.  The only
# per-step MXU work is h @ Whh (x @ Wih + bias was hoisted into matmul_bias).
# Gates arrive pre-packed as [i, f, o, g] so activations are two fused slabs.
# -----------------------------------------------------------------------------
def _lstm_recurrence_kernel(gates_ref, whh_ref, h0_ref, c0_ref,
                            y_ref, hN_ref, cN_ref,
                            h_scr, c_scr, *, unroll):
    chunk = pl.program_id(0)

    @pl.when(chunk == 0)
    def _init():
        h_scr[...] = h0_ref[...]
        c_scr[...] = c0_ref[...]

    nh = h_scr.shape[-1]
    t_chunk = gates_ref.shape[0]

    def step(s, carry):
        h, c = carry
        # gates_ref[s] already holds x_t @ Wih + (b_ih + b_hh)  (bf16).
        # Whh is read from its ref inside the dot so no multi-MiB value is
        # kept live across the serial loop.
        g = gates_ref[s].astype(jnp.float32) + jnp.dot(
            h.astype(jnp.bfloat16), whh_ref[...],
            preferred_element_type=jnp.float32)
        # Packed [i, f, o, g]: one contiguous sigmoid slab, one tanh slab.
        sg = jax.nn.sigmoid(g[:, :3 * nh])
        i_g = sg[:, 0 * nh:1 * nh]
        f_g = sg[:, 1 * nh:2 * nh]
        o_g = sg[:, 2 * nh:3 * nh]
        g_g = jnp.tanh(g[:, 3 * nh:])
        c_new = f_g * c + i_g * g_g
        h_new = o_g * jnp.tanh(c_new)
        y_ref[s] = h_new.astype(y_ref.dtype)
        return h_new, c_new

    h, c = jax.lax.fori_loop(0, t_chunk, step,
                             (h_scr[...], c_scr[...]), unroll=unroll)

    # Carry across chunks; emit the final state every chunk (cheap & robust).
    h_scr[...] = h
    c_scr[...] = c
    hN_ref[...] = h
    cN_ref[...] = c


def _pick_time_chunk(T, B, nhid, *, target=128, vmem_budget_bytes=20 * 1024 * 1024):
    """Largest divisor of T that is <= target and keeps the double-buffered
    bf16 gates + y blocks within a budget that also fits v7x's 64 MiB VMEM
    (leaving room for the two Whh buffers)."""
    G = 4 * nhid
    per_step = B * (G + nhid) * 2 * 2      # bf16, double-buffered in + out
    cap = max(1, vmem_budget_bytes // max(per_step, 1))
    target = max(1, min(target, cap, T))
    t = target
    while T % t != 0:
        t -= 1
    return t


def lstm_recurrence(gates_pre, h0, c0, whh_t):
    """gates_pre: (T, B, 4*nhid) bf16 = x@Wih + b; h0, c0: (B, nhid) f32;
    whh_t: (nhid, 4*nhid) bf16.  Returns y (T, B, nhid) bf16, hN, cN (f32)."""
    T, B, G = gates_pre.shape
    nhid = h0.shape[-1]

    t_chunk = _pick_time_chunk(T, B, nhid)
    num_chunks = T // t_chunk
    # Full unroll for short chunks; partial unroll for longer ones so the LLO
    # scheduler can overlap step s+1's tiny vmatmul with step s's VPU/EUP tail
    # without unbounded code bloat.
    unroll = t_chunk if t_chunk <= 32 else 8

    grid_spec = pltpu.PrefetchScalarGridSpec(
        num_scalar_prefetch=0,
        grid=(num_chunks,),
        in_specs=[
            pl.BlockSpec((t_chunk, B, G), lambda n: (n, 0, 0)),
            # TODO(synk): single-buffer this constant-index Whh block
            # (pipeline_mode) to shave VMEM further at very large nhid.
            pl.BlockSpec((nhid, G), lambda n: (0, 0)),
            pl.BlockSpec((B, nhid), lambda n: (0, 0)),
            pl.BlockSpec((B, nhid), lambda n: (0, 0)),
        ],
        out_specs=[
            pl.BlockSpec((t_chunk, B, nhid), lambda n: (n, 0, 0)),
            pl.BlockSpec((B, nhid), lambda n: (0, 0)),
            pl.BlockSpec((B, nhid), lambda n: (0, 0)),
        ],
        scratch_shapes=[
            pltpu.VMEM((B, nhid), jnp.float32),
            pltpu.VMEM((B, nhid), jnp.float32),
        ],
    )

    y, hN, cN = pl.pallas_call(
        functools.partial(_lstm_recurrence_kernel, unroll=unroll),
        grid_spec=grid_spec,
        out_shape=(
            jax.ShapeDtypeStruct((T, B, nhid), jnp.bfloat16),
            jax.ShapeDtypeStruct((B, nhid), jnp.float32),
            jax.ShapeDtypeStruct((B, nhid), jnp.float32),
        ),
        compiler_params=pltpu.CompilerParams(
            dimension_semantics=("arbitrary",),
            vmem_limit_bytes=64 * 1024 * 1024),
    )(gates_pre, whh_t, h0, c0)
    return y, hN, cN


# -----------------------------------------------------------------------------
# Full Stacked_LSTM forward (eval mode: dropout == identity).
# -----------------------------------------------------------------------------
def stacked_lstm_forward(params, tokens, hidden):
    """tokens: (T, B) int32; hidden: (h0, c0) each (nlayers, B, nhid).

    Returns (decoded (T, B, ntoken) f32, (h_n, c_n) f32)."""
    h0_all, c0_all = hidden
    T, B = tokens.shape
    nhid = h0_all.shape[-1]

    # Pad batch to the f32 sublane width (8); padded rows are sliced off at the end.
    B_pad = _round_up(B, 8)
    if B_pad != B:
        tokens_p = jnp.pad(tokens, ((0, 0), (0, B_pad - B)))
        h0_p = jnp.pad(h0_all, ((0, 0), (0, B_pad - B), (0, 0)))
        c0_p = jnp.pad(c0_all, ((0, 0), (0, B_pad - B), (0, 0)))
    else:
        tokens_p, h0_p, c0_p = tokens, h0_all, c0_all

    # Embedding lookup (gather) kept as JAX glue; dropout is identity in eval mode.
    emb = jnp.take(params["encoder_weight"], tokens_p, axis=0)  # (T, B_pad, ninp)

    x = emb
    h_finals, c_finals = [], []
    for l, lp in enumerate(params["lstm_layers"]):
        in_dim = x.shape[-1]
        # Hoisted input projection + bias over all T*B rows, emitted as bf16 so
        # the (T, B, 4*nhid) HBM round trip into the recurrence is halved.
        gates_pre = matmul_bias(x.reshape(T * B_pad, in_dim),
                                lp["wih_t"], lp["b"], out_dtype=jnp.bfloat16)
        gates_pre = gates_pre.reshape(T, B_pad, 4 * nhid)
        # TODO(synk): fuse the layer-(l+1) input projection into the recurrence
        # (pltpu.emit_pipeline) to remove one full activation HBM pass per layer.
        y, hN, cN = lstm_recurrence(gates_pre,
                                    h0_p[l].astype(jnp.float32),
                                    c0_p[l].astype(jnp.float32),
                                    lp["whh_t"])
        h_finals.append(hN)
        c_finals.append(cN)
        x = y  # bf16; PyTorch inter-layer dropout is identity in eval mode.

    # Decoder over all T*B rows (dropout on output: identity in eval mode).
    out2d = x.reshape(T * B_pad, nhid)
    dec = matmul_bias(out2d, params["decoder_weight_t"], params["decoder_bias"],
                      out_dtype=jnp.float32)
    decoded = dec.reshape(T, B_pad, -1)[:, :B]

    h_n = jnp.stack(h_finals, axis=0)[:, :B]
    c_n = jnp.stack(c_finals, axis=0)[:, :B]
    return decoded, (h_n, c_n)


# -----------------------------------------------------------------------------
# Parameter init (mirrors module __init__ shapes & init ranges).  Weights are
# stored pre-transposed (in_features, out_features) in bf16; gate blocks are
# permuted from PyTorch's [i, f, g, o] packing to [i, f, o, g] so the kernel
# can use one fused sigmoid slab + one tanh slab.
# -----------------------------------------------------------------------------
def _reorder_gate_rows(w, nh):
    return jnp.concatenate([w[:2 * nh], w[3 * nh:], w[2 * nh:3 * nh]], axis=0)


def init_params(key, ntoken, ninp, nhid, nlayers):
    initrange = 0.1
    stdv = 1.0 / jnp.sqrt(jnp.float32(nhid))
    keys = jax.random.split(key, 2 + 4 * nlayers)

    params = {
        "encoder_weight": jax.random.uniform(
            keys[0], (ntoken, ninp), jnp.float32, -initrange, initrange),
        "decoder_weight_t": jax.random.uniform(
            keys[1], (nhid, ntoken), jnp.float32, -initrange, initrange
        ).astype(jnp.bfloat16),
        "decoder_bias": jnp.zeros((1, ntoken), jnp.float32),
        "lstm_layers": [],
    }
    for l in range(nlayers):
        in_dim = ninp if l == 0 else nhid
        k = keys[2 + 4 * l: 2 + 4 * (l + 1)]
        wih = jax.random.uniform(k[0], (4 * nhid, in_dim), jnp.float32, -stdv, stdv)
        whh = jax.random.uniform(k[1], (4 * nhid, nhid), jnp.float32, -stdv, stdv)
        bih = jax.random.uniform(k[2], (4 * nhid,), jnp.float32, -stdv, stdv)
        bhh = jax.random.uniform(k[3], (4 * nhid,), jnp.float32, -stdv, stdv)
        wih = _reorder_gate_rows(wih, nhid)
        whh = _reorder_gate_rows(whh, nhid)
        b = _reorder_gate_rows((bih + bhh).reshape(4 * nhid, 1), nhid)
        params["lstm_layers"].append({
            "wih_t": wih.T.astype(jnp.bfloat16),      # (in_dim, 4*nhid) bf16
            "whh_t": whh.T.astype(jnp.bfloat16),      # (nhid,  4*nhid) bf16
            "b": b.reshape(1, 4 * nhid),              # (1, 4*nhid) f32
        })
    # TODO(synk): pre-pad weight/bias lane dims to 128-multiples here (static)
    # so matmul_bias never pads activations for unaligned vocab/hidden sizes.
    return params


if __name__ == "__main__":
    T, B = 8, 2
    ntoken, ninp, nhid, nlayers = 64, 32, 32, 2

    key = jax.random.PRNGKey(0)
    k_param, k_tok = jax.random.split(key)

    params = init_params(k_param, ntoken, ninp, nhid, nlayers)
    tokens = jax.random.randint(k_tok, (T, B), 0, ntoken, dtype=jnp.int32)
    hidden = (jnp.zeros((nlayers, B, nhid), jnp.float32),
              jnp.zeros((nlayers, B, nhid), jnp.float32))

    decoded, (h_n, c_n) = stacked_lstm_forward(params, tokens, hidden)
    jax.block_until_ready((decoded, h_n, c_n))

    assert decoded.shape == (T, B, ntoken)
    assert h_n.shape == (nlayers, B, nhid)
    assert c_n.shape == (nlayers, B, nhid)
    assert decoded.dtype == jnp.float32
    print("KERNEL_OK")
</pallas_src>

<mosaic_0001>
module attributes {stable_mosaic.version = 11 : i64} {
  func.func @_matmul_bias_kernel(%arg0: i32, %arg1: i32, %arg2: i32, %arg3: memref<64x128xbf16, #tpu.memory_space<vmem>>, %arg4: memref<128x128xbf16, #tpu.memory_space<vmem>>, %arg5: memref<1x128xf32, #tpu.memory_space<vmem>>, %arg6: memref<64x128xbf16, #tpu.memory_space<vmem>>, %arg7: memref<64x128xf32, #tpu.memory_space<vmem>>) attributes {dimension_semantics = [#tpu.dimension_semantics<parallel>, #tpu.dimension_semantics<parallel>, #tpu.dimension_semantics<arbitrary>], iteration_bounds = array<i64: 1, 1, 1>, scalar_prefetch = 0 : i64, scratch_operands = 1 : i64, tpu.core_type = #tpu.core_type<tc>, window_params = [{transform_indices = @transform_0, window_bounds = array<i64: 64, 128>}, {transform_indices = @transform_1, window_bounds = array<i64: 128, 128>}, {transform_indices = @transform_2, window_bounds = array<i64: 1, 128>}, {transform_indices = @transform_3, window_bounds = array<i64: 64, 128>}]} {
    %c0_i32 = arith.constant 0 : i32
    %0 = arith.cmpi eq, %arg2, %c0_i32 : i32
    %1 = arith.extui %0 : i1 to i32
    %c0_i32_0 = arith.constant 0 : i32
    %2 = arith.cmpi ne, %1, %c0_i32_0 : i32
    scf.if %2 {
      %cst_10 = arith.constant 0.000000e+00 : f32
      %12 = vector.broadcast %cst_10 : f32 to vector<64x128xf32>
      %c0_11 = arith.constant 0 : index
      %c0_12 = arith.constant 0 : index
      %13 = vector.load %arg7[%c0_11, %c0_12] : memref<64x128xf32, #tpu.memory_space<vmem>>, vector<64x128xf32>
      tpu.vector_store %arg7[%c0_11, %c0_12], %12 {strides = array<i32>} : memref<64x128xf32, #tpu.memory_space<vmem>>, vector<64x128xf32>,
    } else {
    }
    %c0 = arith.constant 0 : index
    %c0_1 = arith.constant 0 : index
    %3 = vector.load %arg7[%c0, %c0_1] : memref<64x128xf32, #tpu.memory_space<vmem>>, vector<64x128xf32>
    %c0_2 = arith.constant 0 : index
    %c0_3 = arith.constant 0 : index
    %4 = vector.load %arg3[%c0_2, %c0_3] : memref<64x128xbf16, #tpu.memory_space<vmem>>, vector<64x128xbf16>
    %c0_4 = arith.constant 0 : index
    %c0_5 = arith.constant 0 : index
    %5 = vector.load %arg4[%c0_4, %c0_5] : memref<128x128xbf16, #tpu.memory_space<vmem>>, vector<128x128xbf16>
    %cst = arith.constant dense<0.000000e+00> : vector<64x128xf32>
    %6 = tpu.matmul %4, %5, %cst {dimension_numbers = #tpu.dot_dimension_numbers<[1], [0], [0], [1], [0, 0, 1, 1], [], []>} : vector<64x128xbf16>, vector<128x128xbf16>, vector<64x128xf32> -> vector<64x128xf32>
    %7 = arith.addf %3, %6 : vector<64x128xf32>
    %c0_6 = arith.constant 0 : index
    %c0_7 = arith.constant 0 : index
    %8 = vector.load %arg7[%c0_6, %c0_7] : memref<64x128xf32, #tpu.memory_space<vmem>>, vector<64x128xf32>
    tpu.vector_store %arg7[%c0_6, %c0_7], %7 {strides = array<i32>} : memref<64x128xf32, #tpu.memory_space<vmem>>, vector<64x128xf32>,
    %c0_i32_8 = arith.constant 0 : i32
    %9 = arith.cmpi eq, %arg2, %c0_i32_8 : i32
    %10 = arith.extui %9 : i1 to i32
    %c0_i32_9 = arith.constant 0 : i32
    %11 = arith.cmpi ne, %10, %c0_i32_9 : i32
    scf.if %11 {
      %c0_10 = arith.constant 0 : index
      %c0_11 = arith.constant 0 : index
      %12 = vector.load %arg7[%c0_10, %c0_11] : memref<64x128xf32, #tpu.memory_space<vmem>>, vector<64x128xf32>
      %c0_12 = arith.constant 0 : index
      %c0_13 = arith.constant 0 : index
      %13 = vector.load %arg5[%c0_12, %c0_13] : memref<1x128xf32, #tpu.memory_space<vmem>>, vector<1x128xf32>
      %14 = vector.broadcast %13 : vector<1x128xf32> to vector<64x128xf32>
      %15 = arith.addf %12, %14 : vector<64x128xf32>
      %16 = arith.truncf %15 : vector<64x128xf32> to vector<64x128xbf16>
      %c0_14 = arith.constant 0 : index
      %c0_15 = arith.constant 0 : index
      %17 = vector.load %arg6[%c0_14, %c0_15] : memref<64x128xbf16, #tpu.memory_space<vmem>>, vector<64x128xbf16>
      tpu.vector_store %arg6[%c0_14, %c0_15], %16 {strides = array<i32>} : memref<64x128xbf16, #tpu.memory_space<vmem>>, vector<64x128xbf16>,
    } else {
    }
    return
  }
  func.func @transform_0(%arg0: i32, %arg1: i32, %arg2: i32) -> (i32, i32) {
    %c0_i32 = arith.constant 0 : i32
    return %arg0, %arg2 : i32, i32
  }
  func.func @transform_1(%arg0: i32, %arg1: i32, %arg2: i32) -> (i32, i32) {
    %c0_i32 = arith.constant 0 : i32
    return %arg2, %arg1 : i32, i32
  }
  func.func @transform_2(%arg0: i32, %arg1: i32, %arg2: i32) -> (i32, i32) {
    %c0_i32 = arith.constant 0 : i32
    %c0_i32_0 = arith.constant 0 : i32
    return %c0_i32, %arg1 : i32, i32
  }
  func.func @transform_3(%arg0: i32, %arg1: i32, %arg2: i32) -> (i32, i32) {
    %c0_i32 = arith.constant 0 : i32
    return %arg0, %arg1 : i32, i32
  }
}

</mosaic_0001>

<bundles_post_ra>
// kernel: tpu_custom_call.1
= control target key start
LH: loop header
LB: loop body
LE: loop exit
PB: predicated region body
PF: predicated region fallthrough
CT: control target
= control target key end

     0   :  { %8 = vsyncpa [#allocation4], 0  ;;  %s642_s0 = inlined_call_operand.hbm [shape: bf16[64,128], index: 0, kind: input, shape index: {}]   ;;  %s643_s1 = inlined_call_operand.hbm [shape: bf16[128,128], index: 1, kind: input, shape index: {}]   ;;  %s644_s2 = inlined_call_operand.hbm [shape: f32[1,128], index: 2, kind: input, shape index: {}]   ;;  %s645_s3 = inlined_call_operand.hbm [shape: bf16[64,128], index: 3, kind: output, shape index: {}]  }
   0x1   :  { %9 = vsyncpa [#allocation7], 0 }
   0x2   :  { %10 = vsyncpa [#allocation5], 0  ;;  %s552_s12 = smov [#allocation6]   ;;  %s553_s14 = smov [#allocation3]  }
   0x3   :  { %s28_s13 = sshll.u32 %s552_s12, 4  ;;  %s16_s15 = sshll.u32 %s553_s14, 4  ;;  %s29_s13 = int_to_ptr.vmem [resolvable:$true] %s28_s13  ;;  %s578_s15 = int_to_ptr.vmem [resolvable:$true] %s16_s15 }
   0x4   :  { %s458_s18 = scalar_lea.hbm %s643_s1, 1024 }
   0x5   :  { %p459_p0 = scmp.ne.s32.totalorder %s643_s1, %s458_s18  ;;  %p462_p1 = scmp.lt.u32.totalorder %s458_s18, %s643_s1 }
   0x7   :  { %p464_p2 = pnand %p462_p1, %p459_p0 }
   0x9   :  { %467 = shalt.err (!%p464_p2)
}
   0xa   :  { %s468_s23 = scalar_lea.vmem %s29_s13, 1024  ;;  %p473_p4 = scmp.lt.s32.totalorder %s29_s13, %s29_s13 }
   0xb   :  { %p469_p3 = scmp.ne.s32.totalorder %s29_s13, %s468_s23  ;;  %p474_p5 = scmp.lt.s32.totalorder %s468_s23, %s468_s23 }
   0xd   :  { %p475_p6 = por %p474_p5, %p473_p4 }
   0xf   :  { %p476_p7 = pnand %p475_p6, %p469_p3 }
  0x11   :  { %479 = shalt.err (!%p476_p7)
}
  0x12   :  { %s554_s24 = smov 64   ;;  %s555_s25 = smov 4  }
  0x13   :  { %34 = dma.hbm_to_vmem [thread:$0]  %s643_s1, 1024, %s29_s13, [#allocation7], %s554_s24, %s554_s24, %s555_s25  }
  0x14   :  { %s480_s30 = scalar_lea.hbm %s642_s0, 512 }
  0x15   :  { %p481_p8 = scmp.ne.s32.totalorder %s642_s0, %s480_s30  ;;  %p484_p9 = scmp.lt.u32.totalorder %s480_s30, %s642_s0 }
  0x17   :  { %p486_p10 = pnand %p484_p9, %p481_p8 }
  0x19   :  { %489 = shalt.err (!%p486_p10)
}
  0x1a   :  { %s490_s8 = scalar_lea.vmem %s578_s15, 512  ;;  %p495_p12 = scmp.lt.s32.totalorder %s578_s15, %s578_s15 }
  0x1b   :  { %p491_p11 = scmp.ne.s32.totalorder %s578_s15, %s490_s8  ;;  %p496_p13 = scmp.lt.s32.totalorder %s490_s8, %s490_s8 }
  0x1d   :  { %p497_p0 = por %p496_p13, %p495_p12 }
  0x1f   :  { %p498_p1 = pnand %p497_p0, %p491_p11 }
  0x21   :  { %501 = shalt.err (!%p498_p1)
}
  0x22   :  { %22 = dma.hbm_to_vmem [thread:$0]  %s642_s0, 512, %s578_s15, [#allocation4], %s554_s24, %s554_s24, %s555_s25  }
  0x23   :  { %s556_s10 = smov [#allocation8]   ;;  %s502_s14 = scalar_lea.hbm %s644_s2, 16 }
  0x24   :  { %s41_s11 = sshll.u32 %s556_s10, 4  ;;  %p503_p2 = scmp.ne.s32.totalorder %s644_s2, %s502_s14  ;;  %s42_s11 = int_to_ptr.vmem [resolvable:$true] %s41_s11 }
  0x25   :  { %p506_p3 = scmp.lt.u32.totalorder %s502_s14, %s644_s2 }
  0x27   :  { %p508_p4 = pnand %p506_p3, %p503_p2 }
  0x29   :  { %511 = shalt.err (!%p508_p4)
}
  0x2a   :  { %s512_s20 = scalar_lea.vmem %s42_s11, 16  ;;  %s516_s0 = scalar_lea.vmem %s42_s11, 32 }
  0x2b   :  { %p513_p5 = scmp.ne.s32.totalorder %s42_s11, %s512_s20  ;;  %p517_p6 = scmp.lt.s32.totalorder %s42_s11, %s42_s11 }
  0x2c   :  { %p518_p7 = scmp.lt.s32.totalorder %s516_s0, %s512_s20 }
  0x2e   :  { %p519_p8 = por %p518_p7, %p517_p6 }
  0x30   :  { %p520_p9 = pnand %p519_p8, %p513_p5 }
  0x32   :  { %523 = shalt.err (!%p520_p9)
}
  0x33   :  { %44 = dma.hbm_to_vmem [thread:$0]  %s644_s2, 16, %s42_s11, [#allocation7]  }
  0x34   :  { %546 = dma.done.wait [#allocation4], 512  }
  0x35   :  { %547 = vsyncadd [#allocation4], 4294966784 }
  0x36   :  { %548 = dma.done.wait [#allocation7], 1040  }
  0x37   :  { %549 = vsyncadd [#allocation7], 4294966256  ;;  %v446_v0 = vld [vmem:[#allocation6] sm:$0xff]   ;;  %v447_v1 = vld [vmem:[#allocation6 + $0x8] sm:$0xff]   ;;  %s557_s2 = smov [#allocation9]  }
  0x38   :  { %400 = vmatprep.subr.bf16.mxu0 %v446_v0  ;;  %424 = vmatprep.subr.bf16.mxu1 %v446_v0  ;;  %v448_v2 = vld [vmem:[#allocation6 + $0x10] sm:$0xff]   ;;  %v449_v3 = vld [vmem:[#allocation6 + $0x18] sm:$0xff]   ;;  %v454_v4 = vld [vmem:[#allocation3] sm:$0xff]   ;;  %s323_s22 = sshll.u32 %s557_s2, 4  ;;  %s324_s22 = int_to_ptr.vmem [resolvable:$true] %s323_s22 }
  0x39   :  { %401 = vmatpush3.bf16.msra.mxu0 %v446_v0  ;;  %432 = vmatpush3.bf16.msra.mxu1 %v446_v0  ;;  %v455_v5 = vld [vmem:[#allocation3 + $0x10] sm:$0xff]   ;;  %v450_v6 = vld [vmem:[#allocation6 + $0x20] sm:$0xff]   ;;  %v451_v7 = vld [vmem:[#allocation6 + $0x28] sm:$0xff]   ;;  %s524_s23 = scalar_lea.vmem %s324_s22, 512  ;;  %p529_p11 = scmp.lt.s32.totalorder %s324_s22, %s324_s22 }
  0x3a   :  { %402 = vmatprep.subr.bf16.mxu0 %v447_v1  ;;  %425 = vmatprep.subr.bf16.mxu1 %v447_v1  ;;  %v452_v8 = vld [vmem:[#allocation6 + $0x30] sm:$0xff]   ;;  %v453_v9 = vld [vmem:[#allocation6 + $0x38] sm:$0xff]   ;;  %v456_v10 = vld [vmem:[#allocation3 + $0x8] sm:$0xff]   ;;  %p525_p10 = scmp.ne.s32.totalorder %s324_s22, %s524_s23  ;;  %p530_p12 = scmp.lt.s32.totalorder %s524_s23, %s524_s23 }
  0x3b   :  { %416 = vmatprep.mubr.bf16.mxu0 %v454_v4  ;;  %420 = vmatprep.mubr.bf16.mxu1 %v455_v5  ;;  %v457_v11 = vld [vmem:[#allocation3 + $0x18] sm:$0xff]   ;;  %v348_v13 = vld [vmem:[#allocation8] ss:$0 sm:$0xff] }
  0x3c   :  { %p531_p13 = por %p530_p12, %p529_p11 }
  0x3d   :  { %403 = vmatpush3.bf16.msra.mxu0 %v447_v1  ;;  %433 = vmatpush3.bf16.msra.mxu1 %v447_v1 }
  0x3e   :  { %404 = vmatprep.subr.bf16.mxu0 %v448_v2  ;;  %426 = vmatprep.subr.bf16.mxu1 %v448_v2  ;;  %p532_p0 = pnand %p531_p13, %p525_p10 }
  0x41   :  { %405 = vmatpush3.bf16.msra.mxu0 %v448_v2  ;;  %434 = vmatpush3.bf16.msra.mxu1 %v448_v2 }
  0x42   :  { %406 = vmatprep.subr.bf16.mxu0 %v449_v3  ;;  %427 = vmatprep.subr.bf16.mxu1 %v449_v3 }
  0x45   :  { %407 = vmatpush3.bf16.msra.mxu0 %v449_v3  ;;  %435 = vmatpush3.bf16.msra.mxu1 %v449_v3 }
  0x46   :  { %408 = vmatprep.subr.bf16.mxu0 %v450_v6  ;;  %428 = vmatprep.subr.bf16.mxu1 %v450_v6 }
  0x49   :  { %409 = vmatpush3.bf16.msra.mxu0 %v450_v6  ;;  %436 = vmatpush3.bf16.msra.mxu1 %v450_v6 }
  0x4a   :  { %410 = vmatprep.subr.bf16.mxu0 %v451_v7  ;;  %429 = vmatprep.subr.bf16.mxu1 %v451_v7 }
  0x4d   :  { %411 = vmatpush3.bf16.msra.mxu0 %v451_v7  ;;  %437 = vmatpush3.bf16.msra.mxu1 %v451_v7 }
  0x4e   :  { %412 = vmatprep.subr.bf16.mxu0 %v452_v8  ;;  %430 = vmatprep.subr.bf16.mxu1 %v452_v8 }
  0x51   :  { %413 = vmatpush3.bf16.msra.mxu0 %v452_v8  ;;  %438 = vmatpush3.bf16.msra.mxu1 %v452_v8 }
  0x52   :  { %414 = vmatprep.subr.bf16.mxu0 %v453_v9  ;;  %431 = vmatprep.subr.bf16.mxu1 %v453_v9 }
  0x55   :  { %415 = vmatpush3.bf16.msra.mxu0 %v453_v9  ;;  %439 = vmatpush3.bf16.msra.mxu1 %v453_v9 }
  0x58   :  { %417 = vmatmul.mubr.bf16.vlgmr.msra.gmra.mrb[0].mxu0 %v456_v10  ;;  %421 = vmatmul.mubr.bf16.vlgmr.msra.gmra.mrb[0].mxu1 %v457_v11 }
 0x12b   :  { %v418_v12 = vpop.f32.mrb[0].mxu0  ;;  %v422_v14 = vpop.f32.mrb[0].mxu1 }
 0x12c   :  { %v205_v15 = vpop.f32.mrb[1].mxu0  ;;  %v221_v16 = vpop.f32.mrb[1].mxu1  ;;  %v272_v19 = vadd.f32 %v418_v12, %v348_v13  ;;  %v276_v20 = vadd.f32 %v422_v14, %v348_v13 }
 0x12d   :  { %v419_v17 = vpop.f32.mrb[2].mxu0  ;;  %v423_v18 = vpop.f32.mrb[2].mxu1  ;;  %v270_v25 = vadd.f32 %v348_v13, %v205_v15  ;;  %v274_v26 = vadd.f32 %v348_v13, %v221_v16 }
 0x12e   :  { %v273_v21 = vadd.f32 %v419_v17, %v348_v13  ;;  %v277_v22 = vadd.f32 %v423_v18, %v348_v13  ;;  %v208_v23 = vpop.f32.mrb[3].mxu0  ;;  %v224_v24 = vpop.f32.mrb[3].mxu1 }
 0x12f   :  { %v271_v27 = vadd.f32 %v348_v13, %v208_v23  ;;  %v275_v28 = vadd.f32 %v348_v13, %v224_v24 }
 0x130   :  { %v373_v29 = vpack.c.bf16 %v273_v21, %v272_v19  ;;  %v383_v30 = vpack.c.bf16 %v277_v22, %v276_v20 }
 0x131   :  { %v368_v31 = vpack.c.bf16 %v271_v27, %v270_v25  ;;  %v378_v32 = vpack.c.bf16 %v275_v28, %v274_v26 }
 0x132   :  { %385 = vst [vmem:[#allocation9 + $0x8] sm:$0xff] %v373_v29   ;;  %387 = vst [vmem:[#allocation9 + $0x18] sm:$0xff] %v383_v30  }
 0x133   :  { %369 = vst [vmem:[#allocation9] sm:$0xff] %v368_v31   ;;  %386 = vst [vmem:[#allocation9 + $0x10] sm:$0xff] %v378_v32  }
 0x134   :  { %535 = shalt.err (!%p532_p0)
}
 0x135   :  { %s536_s28 = scalar_lea.hbm %s645_s3, 512 }
 0x136   :  { %p537_p1 = scmp.ne.s32.totalorder %s645_s3, %s536_s28  ;;  %p540_p2 = scmp.lt.u32.totalorder %s536_s28, %s645_s3 }
 0x138   :  { %p542_p3 = pnand %p540_p2, %p537_p1 }
 0x13a   :  { %545 = shalt.err (!%p542_p3)
}
 0x13b   :  { %329 = dma.vmem_to_hbm [thread:$0]  %s324_s22, 512, %s645_s3, [#allocation5], %s554_s24, %s554_s24, %s555_s25  }
 0x13c   :  { %550 = dma.done.wait [#allocation5], 512  }
 0x13d   :  { %551 = vsyncadd [#allocation5], 4294966784 }
 0x13e   :  { %333 = vsyncpa [#allocation4], 1 }
 0x13f   :  { %334 = vsyncpa [#allocation7], 1 }
 0x140   :  { %335 = vsyncpa [#allocation5], 1 }

</bundles_post_ra>
